<compile_context>
chip_gen: v6e
topology: v6e:2x2x1
jax: 0.10.0
libtpu: 0.0.40
codegen_flags: <defaults>
</compile_context>

<pallas_src>
import functools

import jax
import jax.numpy as jnp
from jax.experimental import pallas as pl
from jax.experimental.pallas import tpu as pltpu

_LANE = 128        # rows per vreg lane group (fixed TPU lane width)
_MAX_TILE = 16384  # rows per grid step; C<=26 f32 -> <=1.7MB/buffer, VMEM-safe


def _round_up(x, m):
    return (x + m - 1) // m * m


def _pick_tile(n):
    """Lane-aligned row tile.  Large enough to amortize per-step overhead,
    but split into >= 2 tiles when possible so a 2-TC chip (v7x) can shard
    the 'parallel' grid axis across cores."""
    npad_min = _round_up(max(n, 1), _LANE)
    if npad_min >= 2 * _LANE:
        half = _round_up((npad_min + 1) // 2, _LANE)
    else:
        half = npad_min
    tile = min(_MAX_TILE, half)
    npad = _round_up(npad_min, tile)
    return tile, npad


def _write_partials(out_ref, loss_sum, cnt, corr):
    """Lane-dense (1, 8, 128) partial block: lane0=loss_sum, 1=cnt, 2=corr."""
    lane = jax.lax.broadcasted_iota(jnp.int32, out_ref.shape, 2)
    out_ref[...] = jnp.where(
        lane == 0, loss_sum,
        jnp.where(lane == 1, cnt, jnp.where(lane == 2, corr, 0.0)))


def _ce_acc_kernel(logits_ref, tgt_ref, out_ref, *, ignore, num_classes):
    """Generic C path: masked-CE partial sum + valid count + correct count.

    Classes on the sublane axis (true C), rows lane-dense.  Upcast to f32 is
    the first in-kernel op so the DMA stays in the input dtype.
    """
    x = logits_ref[...].astype(jnp.float32)                # (C, T)
    tgt = tgt_ref[...]                                     # (1, T) i32
    c, t = x.shape

    class_ids = jax.lax.broadcasted_iota(jnp.int32, (c, t), 0)
    onehot = class_ids == tgt                              # (C, T) bool

    row_max = jnp.max(x, axis=0, keepdims=True)            # (1, T)
    lse = row_max + jnp.log(
        jnp.sum(jnp.exp(x - row_max), axis=0, keepdims=True))
    # Safe gather via where(): padded/garbage logits never hit 0 * inf.
    tgt_logit = jnp.sum(jnp.where(onehot, x, 0.0), axis=0, keepdims=True)
    per_row_loss = lse - tgt_logit                         # (1, T)

    valid = tgt != ignore                                  # (1, T) bool
    # torch.argmax picks the FIRST index attaining the max; replicate exactly
    # (min class index among ties at the row max).
    first_max_idx = jnp.min(
        jnp.where(x == row_max, class_ids, num_classes), axis=0, keepdims=True)
    correct = valid & (first_max_idx == tgt)

    loss_sum = jnp.sum(jnp.where(valid, per_row_loss, 0.0))
    cnt = jnp.sum(valid.astype(jnp.float32))
    corr = jnp.sum(correct.astype(jnp.float32))
    _write_partials(out_ref, loss_sum, cnt, corr)


def _ce_acc_kernel_c2(logits_ref, tgt_ref, out_ref, *, ignore):
    """C == 2 fast path (edge branch): closed-form binary CE + sign compare.

    CE = softplus(x_other - x_tgt); argmax tie goes to class 0 to match
    torch.argmax first-index semantics.
    """
    x = logits_ref[...].astype(jnp.float32)                # (2, T)
    x0 = x[0:1, :]
    x1 = x[1:2, :]
    tgt = tgt_ref[...]                                     # (1, T) i32

    valid = tgt != ignore
    is1 = tgt == 1
    x_t = jnp.where(is1, x1, x0)
    x_o = jnp.where(is1, x0, x1)
    d = x_o - x_t
    # Numerically stable softplus(d) = max(d, 0) + log(1 + exp(-|d|)).
    per_row_loss = jnp.maximum(d, 0.0) + jnp.log(1.0 + jnp.exp(-jnp.abs(d)))

    pred = (x1 > x0).astype(jnp.int32)                     # tie -> class 0
    correct = valid & (pred == tgt)

    loss_sum = jnp.sum(jnp.where(valid, per_row_loss, 0.0))
    cnt = jnp.sum(valid.astype(jnp.float32))
    corr = jnp.sum(correct.astype(jnp.float32))
    _write_partials(out_ref, loss_sum, cnt, corr)


def _ce_and_acc(preds, targets, ignore):
    """CrossEntropyLoss(ignore_index=ignore, reduction='mean') + accuracy(%)."""
    n, c = preds.shape
    tile, npad = _pick_tile(n)
    num_tiles = npad // tile

    # Rows onto the lane axis, true class count on the sublane axis.  Keep the
    # input dtype (bf16 stays bf16 on the DMA); pad rows are tagged `ignore`.
    logits_t = jnp.pad(preds.T, ((0, 0), (0, npad - n)))
    tgt = jnp.pad(targets.astype(jnp.int32), (0, npad - n),
                  constant_values=ignore)[None, :]

    if c == 2:
        kernel = functools.partial(_ce_acc_kernel_c2, ignore=ignore)
    else:
        kernel = functools.partial(_ce_acc_kernel, ignore=ignore, num_classes=c)

    partials = pl.pallas_call(
        kernel,
        out_shape=jax.ShapeDtypeStruct((num_tiles, 8, _LANE), jnp.float32),
        grid=(num_tiles,),
        in_specs=[
            pl.BlockSpec((c, tile), lambda i: (0, i)),   # logits (C, N) tiles
            pl.BlockSpec((1, tile), lambda i: (0, i)),   # targets (1, N) tiles
        ],
        out_specs=pl.BlockSpec((1, 8, _LANE), lambda i: (i, 0, 0)),
        # "parallel" lets a 2-TC part shard row tiles; on v7x one could also
        # try pltpu.CORE_PARALLEL here (no effect on single-TC v5e/v6e).
        compiler_params=pltpu.CompilerParams(
            dimension_semantics=("parallel",)),
    )(logits_t, tgt)

    sums = jnp.sum(partials[:, 0, :], axis=0)             # (128,)
    loss_sum, cnt, corr = sums[0], sums[1], sums[2]
    denom = jnp.maximum(cnt, 1.0)
    # TODO(synk): torch returns NaN when every target is ignored; we return 0.
    loss = loss_sum / denom
    acc = 100.0 * corr / denom
    return loss, acc


@functools.partial(
    jax.jit,
    static_argnames=("node_ignore", "edge_ignore", "node_weight", "edge_weight"))
def _sdmgr_losses(node_preds, edge_preds, node_gts, edge_gts, *,
                  node_ignore, edge_ignore, node_weight, edge_weight):
    # One XLA program: cast/transpose/pad + both pallas_calls + reductions.
    loss_node, acc_node = _ce_and_acc(node_preds, node_gts, node_ignore)
    loss_edge, acc_edge = _ce_and_acc(edge_preds, edge_gts, edge_ignore)
    return dict(
        loss_node=node_weight * loss_node,
        loss_edge=edge_weight * loss_edge,
        acc_node=acc_node,
        acc_edge=acc_edge,
    )


class SDMGRLoss:
    """JAX/Pallas port of mmocr SDMGRLoss.forward."""

    def __init__(self, node_weight=1.0, edge_weight=1.0, ignore=-100):
        self.node_weight = float(node_weight)
        self.edge_weight = float(edge_weight)
        self.ignore = int(ignore)

    def __call__(self, node_preds, edge_preds, gts, len_of_nodes):
        # len_of_nodes must be plain Python ints (static): int() on a device
        # array would block on a host sync and force a retrace every step.
        node_gts, edge_gts = [], []
        for ind, gt in enumerate(gts):
            n = int(len_of_nodes[ind])
            node_gts.append(gt[:n])
            edge_gts.append(gt[n:].reshape(-1))
        node_gts = jnp.concatenate(node_gts).astype(jnp.int32)
        edge_gts = jnp.concatenate(edge_gts).astype(jnp.int32)

        return _sdmgr_losses(
            node_preds, edge_preds, node_gts, edge_gts,
            node_ignore=self.ignore, edge_ignore=-1,
            node_weight=self.node_weight, edge_weight=self.edge_weight)


def _ref_ce_acc(preds, tgts, ignore):
    """Pure-JAX reference for validation."""
    preds = preds.astype(jnp.float32)
    tgts = tgts.astype(jnp.int32)
    valid = tgts != ignore
    logp = jax.nn.log_softmax(preds, axis=-1)
    tl = jnp.take_along_axis(logp, jnp.clip(tgts, 0)[:, None], axis=-1)[:, 0]
    cnt = jnp.maximum(jnp.sum(valid.astype(jnp.float32)), 1.0)
    loss = -jnp.sum(jnp.where(valid, tl, 0.0)) / cnt
    acc = 100.0 * jnp.sum(
        (valid & (jnp.argmax(preds, -1) == tgts)).astype(jnp.float32)) / cnt
    return loss, acc


if __name__ == "__main__":
    key = jax.random.PRNGKey(0)
    node_classes, edge_classes = 4, 2
    len_of_nodes = [3, 5]
    total_nodes = sum(len_of_nodes)                       # 8
    total_edges = sum(n * n for n in len_of_nodes)        # 34

    k1, k2, k3 = jax.random.split(key, 3)
    node_preds = jax.random.normal(k1, (total_nodes, node_classes), jnp.float32)
    edge_preds = jax.random.normal(k2, (total_edges, edge_classes), jnp.float32)

    gts = []
    kk = k3
    for n in len_of_nodes:
        kk, ka, kb = jax.random.split(kk, 3)
        node_lab = jax.random.randint(ka, (n,), 0, node_classes)
        node_lab = node_lab.at[0].set(-100)               # include an ignored node
        edge_lab = jax.random.randint(kb, (n * n,), -1, edge_classes)  # -1 = ignore
        gts.append(jnp.concatenate([node_lab, edge_lab]).astype(jnp.int32))

    loss_fn = SDMGRLoss(node_weight=1.0, edge_weight=1.0, ignore=-100)
    out = loss_fn(node_preds, edge_preds, gts, len_of_nodes)
    jax.block_until_ready(out)

    # Silent correctness check against the pure-JAX reference.
    node_gts_ref = jnp.concatenate([g[:n] for g, n in zip(gts, len_of_nodes)])
    edge_gts_ref = jnp.concatenate([g[n:] for g, n in zip(gts, len_of_nodes)])
    rl_n, ra_n = _ref_ce_acc(node_preds, node_gts_ref, -100)
    rl_e, ra_e = _ref_ce_acc(edge_preds, edge_gts_ref, -1)
    assert jnp.allclose(out["loss_node"], rl_n, atol=1e-4)
    assert jnp.allclose(out["loss_edge"], rl_e, atol=1e-4)
    assert jnp.allclose(out["acc_node"], ra_n, atol=1e-3)
    assert jnp.allclose(out["acc_edge"], ra_e, atol=1e-3)

    print("KERNEL_OK")
</pallas_src>

<mosaic_0001>
module attributes {stable_mosaic.version = 11 : i64} {
  func.func @_ce_acc_kernel_c2(%arg0: i32, %arg1: memref<2x128xf32, #tpu.memory_space<vmem>>, %arg2: memref<1x128xi32, #tpu.memory_space<vmem>>, %arg3: memref<1x8x128xf32, #tpu.memory_space<vmem>>) attributes {dimension_semantics = [#tpu.dimension_semantics<parallel>], iteration_bounds = array<i64: 1>, scalar_prefetch = 0 : i64, scratch_operands = 0 : i64, tpu.core_type = #tpu.core_type<tc>, window_params = [{transform_indices = @transform_0, window_bounds = array<i64: 2, 128>}, {transform_indices = @transform_1, window_bounds = array<i64: 1, 128>}, {transform_indices = @transform_2, window_bounds = array<i64: 1, 8, 128>}]} {
    %c0 = arith.constant 0 : index
    %c0_0 = arith.constant 0 : index
    %0 = vector.load %arg1[%c0, %c0_0] : memref<2x128xf32, #tpu.memory_space<vmem>>, vector<2x128xf32>
    %1 = vector.extract_strided_slice %0 {offsets = [0, 0], sizes = [1, 128], strides = [1, 1]} : vector<2x128xf32> to vector<1x128xf32>
    %2 = vector.extract_strided_slice %0 {offsets = [1, 0], sizes = [1, 128], strides = [1, 1]} : vector<2x128xf32> to vector<1x128xf32>
    %c0_1 = arith.constant 0 : index
    %c0_2 = arith.constant 0 : index
    %3 = vector.load %arg2[%c0_1, %c0_2] : memref<1x128xi32, #tpu.memory_space<vmem>>, vector<1x128xi32>
    %c-1_i32 = arith.constant -1 : i32
    %4 = vector.broadcast %c-1_i32 : i32 to vector<1x128xi32>
    %5 = arith.cmpi ne, %3, %4 : vector<1x128xi32>
    %c1_i32 = arith.constant 1 : i32
    %6 = vector.broadcast %c1_i32 : i32 to vector<1x128xi32>
    %7 = arith.cmpi eq, %3, %6 : vector<1x128xi32>
    %8 = arith.select %7, %2, %1 : vector<1x128xi1>, vector<1x128xf32>
    %9 = arith.select %7, %1, %2 : vector<1x128xi1>, vector<1x128xf32>
    %10 = arith.subf %9, %8 : vector<1x128xf32>
    %cst = arith.constant 0.000000e+00 : f32
    %11 = vector.broadcast %cst : f32 to vector<1x128xf32>
    %12 = arith.maximumf %10, %11 : vector<1x128xf32>
    %13 = math.absf %10 : vector<1x128xf32>
    %cst_3 = arith.constant 0.000000e+00 : f32
    %14 = vector.broadcast %cst_3 : f32 to vector<1x128xf32>
    %15 = arith.subf %14, %13 : vector<1x128xf32>
    %16 = math.exp %15 : vector<1x128xf32>
    %cst_4 = arith.constant 1.000000e+00 : f32
    %17 = vector.broadcast %cst_4 : f32 to vector<1x128xf32>
    %18 = arith.addf %17, %16 : vector<1x128xf32>
    %19 = math.log %18 : vector<1x128xf32>
    %20 = arith.addf %12, %19 : vector<1x128xf32>
    %21 = arith.cmpf ogt, %2, %1 : vector<1x128xf32>
    %22 = arith.extui %21 : vector<1x128xi1> to vector<1x128xi32>
    %23 = arith.cmpi eq, %22, %3 : vector<1x128xi32>
    %24 = arith.andi %5, %23 : vector<1x128xi1>
    %cst_5 = arith.constant 0.000000e+00 : f32
    %25 = vector.broadcast %cst_5 : f32 to vector<1x128xf32>
    %26 = arith.select %5, %20, %25 : vector<1x128xi1>, vector<1x128xf32>
    %27 = vector.shape_cast %26 : vector<1x128xf32> to vector<1x1x128xf32>
    %cst_6 = arith.constant dense<0.000000e+00> : vector<1xf32>
    %28 = vector.multi_reduction <add>, %27, %cst_6 [1, 2] : vector<1x1x128xf32> to vector<1xf32>
    %29 = vector.shape_cast %28 : vector<1xf32> to vector<1x1x1xf32>
    %30 = vector.extract %29[0, 0, 0] : f32 from vector<1x1x1xf32>
    %31 = arith.extui %5 : vector<1x128xi1> to vector<1x128xi32>
    %32 = arith.sitofp %31 : vector<1x128xi32> to vector<1x128xf32>
    %33 = vector.shape_cast %32 : vector<1x128xf32> to vector<1x1x128xf32>
    %cst_7 = arith.constant dense<0.000000e+00> : vector<1xf32>
    %34 = vector.multi_reduction <add>, %33, %cst_7 [1, 2] : vector<1x1x128xf32> to vector<1xf32>
    %35 = vector.shape_cast %34 : vector<1xf32> to vector<1x1x1xf32>
    %36 = vector.extract %35[0, 0, 0] : f32 from vector<1x1x1xf32>
    %37 = arith.extui %24 : vector<1x128xi1> to vector<1x128xi32>
    %38 = arith.sitofp %37 : vector<1x128xi32> to vector<1x128xf32>
    %39 = vector.shape_cast %38 : vector<1x128xf32> to vector<1x1x128xf32>
    %cst_8 = arith.constant dense<0.000000e+00> : vector<1xf32>
    %40 = vector.multi_reduction <add>, %39, %cst_8 [1, 2] : vector<1x1x128xf32> to vector<1xf32>
    %41 = vector.shape_cast %40 : vector<1xf32> to vector<1x1x1xf32>
    %42 = vector.extract %41[0, 0, 0] : f32 from vector<1x1x1xf32>
    %43 = tpu.iota {dimensions = array<i32: 2>} : vector<1x8x128xi32>
    %c0_i32 = arith.constant 0 : i32
    %44 = vector.broadcast %c0_i32 : i32 to vector<1x8x128xi32>
    %45 = arith.cmpi eq, %43, %44 : vector<1x8x128xi32>
    %c1_i32_9 = arith.constant 1 : i32
    %46 = vector.broadcast %c1_i32_9 : i32 to vector<1x8x128xi32>
    %47 = arith.cmpi eq, %43, %46 : vector<1x8x128xi32>
    %c2_i32 = arith.constant 2 : i32
    %48 = vector.broadcast %c2_i32 : i32 to vector<1x8x128xi32>
    %49 = arith.cmpi eq, %43, %48 : vector<1x8x128xi32>
    %cst_10 = arith.constant 0.000000e+00 : f32
    %50 = vector.broadcast %42 : f32 to vector<1x8x128xf32>
    %51 = vector.broadcast %cst_10 : f32 to vector<1x8x128xf32>
    %52 = arith.select %49, %50, %51 : vector<1x8x128xi1>, vector<1x8x128xf32>
    %53 = vector.broadcast %36 : f32 to vector<1x8x128xf32>
    %54 = arith.select %47, %53, %52 : vector<1x8x128xi1>, vector<1x8x128xf32>
    %55 = vector.broadcast %30 : f32 to vector<1x8x128xf32>
    %56 = arith.select %45, %55, %54 : vector<1x8x128xi1>, vector<1x8x128xf32>
    %c0_11 = arith.constant 0 : index
    %c0_12 = arith.constant 0 : index
    %c0_13 = arith.constant 0 : index
    %57 = vector.load %arg3[%c0_11, %c0_12, %c0_13] : memref<1x8x128xf32, #tpu.memory_space<vmem>>, vector<1x8x128xf32>
    tpu.vector_store %arg3[%c0_11, %c0_12, %c0_13], %56 {strides = array<i32>} : memref<1x8x128xf32, #tpu.memory_space<vmem>>, vector<1x8x128xf32>,
    return
  }
  func.func @transform_0(%arg0: i32) -> (i32, i32) {
    %c0_i32 = arith.constant 0 : i32
    %c0_i32_0 = arith.constant 0 : i32
    return %c0_i32, %arg0 : i32, i32
  }
  func.func @transform_1(%arg0: i32) -> (i32, i32) {
    %c0_i32 = arith.constant 0 : i32
    %c0_i32_0 = arith.constant 0 : i32
    return %c0_i32, %arg0 : i32, i32
  }
  func.func @transform_2(%arg0: i32) -> (i32, i32, i32) {
    %c0_i32 = arith.constant 0 : i32
    %c0_i32_0 = arith.constant 0 : i32
    %c0_i32_1 = arith.constant 0 : i32
    return %arg0, %c0_i32, %c0_i32_0 : i32, i32, i32
  }
}

module attributes {stable_mosaic.version = 11 : i64} {
  func.func @_ce_acc_kernel(%arg0: i32, %arg1: memref<4x128xf32, #tpu.memory_space<vmem>>, %arg2: memref<1x128xi32, #tpu.memory_space<vmem>>, %arg3: memref<1x8x128xf32, #tpu.memory_space<vmem>>) attributes {dimension_semantics = [#tpu.dimension_semantics<parallel>], iteration_bounds = array<i64: 1>, scalar_prefetch = 0 : i64, scratch_operands = 0 : i64, tpu.core_type = #tpu.core_type<tc>, window_params = [{transform_indices = @transform_0, window_bounds = array<i64: 4, 128>}, {transform_indices = @transform_1, window_bounds = array<i64: 1, 128>}, {transform_indices = @transform_2, window_bounds = array<i64: 1, 8, 128>}]} {
    %c0 = arith.constant 0 : index
    %c0_0 = arith.constant 0 : index
    %0 = vector.load %arg1[%c0, %c0_0] : memref<4x128xf32, #tpu.memory_space<vmem>>, vector<4x128xf32>
    %c0_1 = arith.constant 0 : index
    %c0_2 = arith.constant 0 : index
    %1 = vector.load %arg2[%c0_1, %c0_2] : memref<1x128xi32, #tpu.memory_space<vmem>>, vector<1x128xi32>
    %2 = tpu.iota {dimensions = array<i32: 0>} : vector<4x128xi32>
    %3 = vector.broadcast %1 : vector<1x128xi32> to vector<4x128xi32>
    %4 = arith.cmpi eq, %2, %3 : vector<4x128xi32>
    %cst = arith.constant dense<0xFF800000> : vector<128xf32>
    %5 = vector.multi_reduction <maximumf>, %0, %cst [0] : vector<4x128xf32> to vector<128xf32>
    %6 = vector.shape_cast %5 : vector<128xf32> to vector<1x128xf32>
    %7 = vector.broadcast %6 : vector<1x128xf32> to vector<4x128xf32>
    %8 = arith.subf %0, %7 : vector<4x128xf32>
    %9 = math.exp %8 : vector<4x128xf32>
    %cst_3 = arith.constant dense<0.000000e+00> : vector<128xf32>
    %10 = vector.multi_reduction <add>, %9, %cst_3 [0] : vector<4x128xf32> to vector<128xf32>
    %11 = vector.shape_cast %10 : vector<128xf32> to vector<1x128xf32>
    %12 = math.log %11 : vector<1x128xf32>
    %13 = arith.addf %6, %12 : vector<1x128xf32>
    %cst_4 = arith.constant 0.000000e+00 : f32
    %14 = vector.broadcast %cst_4 : f32 to vector<4x128xf32>
    %15 = arith.select %4, %0, %14 : vector<4x128xi1>, vector<4x128xf32>
    %cst_5 = arith.constant dense<0.000000e+00> : vector<128xf32>
    %16 = vector.multi_reduction <add>, %15, %cst_5 [0] : vector<4x128xf32> to vector<128xf32>
    %17 = vector.shape_cast %16 : vector<128xf32> to vector<1x128xf32>
    %18 = arith.subf %13, %17 : vector<1x128xf32>
    %c-100_i32 = arith.constant -100 : i32
    %19 = vector.broadcast %c-100_i32 : i32 to vector<1x128xi32>
    %20 = arith.cmpi ne, %1, %19 : vector<1x128xi32>
    %21 = vector.broadcast %6 : vector<1x128xf32> to vector<4x128xf32>
    %22 = arith.cmpf oeq, %0, %21 : vector<4x128xf32>
    %c4_i32 = arith.constant 4 : i32
    %23 = vector.broadcast %c4_i32 : i32 to vector<4x128xi32>
    %24 = arith.select %22, %2, %23 : vector<4x128xi1>, vector<4x128xi32>
    %cst_6 = arith.constant dense<2147483647> : vector<128xi32>
    %25 = vector.multi_reduction <minsi>, %24, %cst_6 [0] : vector<4x128xi32> to vector<128xi32>
    %26 = vector.shape_cast %25 : vector<128xi32> to vector<1x128xi32>
    %27 = arith.cmpi eq, %26, %1 : vector<1x128xi32>
    %28 = arith.andi %20, %27 : vector<1x128xi1>
    %cst_7 = arith.constant 0.000000e+00 : f32
    %29 = vector.broadcast %cst_7 : f32 to vector<1x128xf32>
    %30 = arith.select %20, %18, %29 : vector<1x128xi1>, vector<1x128xf32>
    %31 = vector.shape_cast %30 : vector<1x128xf32> to vector<1x1x128xf32>
    %cst_8 = arith.constant dense<0.000000e+00> : vector<1xf32>
    %32 = vector.multi_reduction <add>, %31, %cst_8 [1, 2] : vector<1x1x128xf32> to vector<1xf32>
    %33 = vector.shape_cast %32 : vector<1xf32> to vector<1x1x1xf32>
    %34 = vector.extract %33[0, 0, 0] : f32 from vector<1x1x1xf32>
    %35 = arith.extui %20 : vector<1x128xi1> to vector<1x128xi32>
    %36 = arith.sitofp %35 : vector<1x128xi32> to vector<1x128xf32>
    %37 = vector.shape_cast %36 : vector<1x128xf32> to vector<1x1x128xf32>
    %cst_9 = arith.constant dense<0.000000e+00> : vector<1xf32>
    %38 = vector.multi_reduction <add>, %37, %cst_9 [1, 2] : vector<1x1x128xf32> to vector<1xf32>
    %39 = vector.shape_cast %38 : vector<1xf32> to vector<1x1x1xf32>
    %40 = vector.extract %39[0, 0, 0] : f32 from vector<1x1x1xf32>
    %41 = arith.extui %28 : vector<1x128xi1> to vector<1x128xi32>
    %42 = arith.sitofp %41 : vector<1x128xi32> to vector<1x128xf32>
    %43 = vector.shape_cast %42 : vector<1x128xf32> to vector<1x1x128xf32>
    %cst_10 = arith.constant dense<0.000000e+00> : vector<1xf32>
    %44 = vector.multi_reduction <add>, %43, %cst_10 [1, 2] : vector<1x1x128xf32> to vector<1xf32>
    %45 = vector.shape_cast %44 : vector<1xf32> to vector<1x1x1xf32>
    %46 = vector.extract %45[0, 0, 0] : f32 from vector<1x1x1xf32>
    %47 = tpu.iota {dimensions = array<i32: 2>} : vector<1x8x128xi32>
    %c0_i32 = arith.constant 0 : i32
    %48 = vector.broadcast %c0_i32 : i32 to vector<1x8x128xi32>
    %49 = arith.cmpi eq, %47, %48 : vector<1x8x128xi32>
    %c1_i32 = arith.constant 1 : i32
    %50 = vector.broadcast %c1_i32 : i32 to vector<1x8x128xi32>
    %51 = arith.cmpi eq, %47, %50 : vector<1x8x128xi32>
    %c2_i32 = arith.constant 2 : i32
    %52 = vector.broadcast %c2_i32 : i32 to vector<1x8x128xi32>
    %53 = arith.cmpi eq, %47, %52 : vector<1x8x128xi32>
    %cst_11 = arith.constant 0.000000e+00 : f32
    %54 = vector.broadcast %46 : f32 to vector<1x8x128xf32>
    %55 = vector.broadcast %cst_11 : f32 to vector<1x8x128xf32>
    %56 = arith.select %53, %54, %55 : vector<1x8x128xi1>, vector<1x8x128xf32>
    %57 = vector.broadcast %40 : f32 to vector<1x8x128xf32>
    %58 = arith.select %51, %57, %56 : vector<1x8x128xi1>, vector<1x8x128xf32>
    %59 = vector.broadcast %34 : f32 to vector<1x8x128xf32>
    %60 = arith.select %49, %59, %58 : vector<1x8x128xi1>, vector<1x8x128xf32>
    %c0_12 = arith.constant 0 : index
    %c0_13 = arith.constant 0 : index
    %c0_14 = arith.constant 0 : index
    %61 = vector.load %arg3[%c0_12, %c0_13, %c0_14] : memref<1x8x128xf32, #tpu.memory_space<vmem>>, vector<1x8x128xf32>
    tpu.vector_store %arg3[%c0_12, %c0_13, %c0_14], %60 {strides = array<i32>} : memref<1x8x128xf32, #tpu.memory_space<vmem>>, vector<1x8x128xf32>,
    return
  }
  func.func @transform_0(%arg0: i32) -> (i32, i32) {
    %c0_i32 = arith.constant 0 : i32
    %c0_i32_0 = arith.constant 0 : i32
    return %c0_i32, %arg0 : i32, i32
  }
  func.func @transform_1(%arg0: i32) -> (i32, i32) {
    %c0_i32 = arith.constant 0 : i32
    %c0_i32_0 = arith.constant 0 : i32
    return %c0_i32, %arg0 : i32, i32
  }
  func.func @transform_2(%arg0: i32) -> (i32, i32, i32) {
    %c0_i32 = arith.constant 0 : i32
    %c0_i32_0 = arith.constant 0 : i32
    %c0_i32_1 = arith.constant 0 : i32
    return %arg0, %c0_i32, %c0_i32_0 : i32, i32, i32
  }
}

</mosaic_0001>

<bundles_post_ra>
// kernel: _sdmgr_losses.3
= control target key start
LH: loop header
LB: loop body
LE: loop exit
PB: predicated region body
PF: predicated region fallthrough
CT: control target
= control target key end

     0   :  { %v19_v0 = vlaneseq  ;;  %v138_v2 = vmov 1966171168   ;;  %v139_v10 = vmov 0   ;;  %vm72_vm5 = vcmask 1040384   ;;  %s173_s0 = inlined_call_operand.vmem [shape: f32[2,128], index: 0, kind: input, shape index: {}]   ;;  %s174_s1 = inlined_call_operand.vmem [shape: s32[1,128], index: 1, kind: input, shape index: {}]   ;;  %s175_s2 = inlined_call_operand.vmem [shape: f32[1,8,128], index: 2, kind: output, shape index: {}]  }
   0x1   :  { %v11_v1 = vld [vmem:[%s173_s0] sm:$0x3]  ;;  %v17_v3 = vunpack.c.l.s4 %v138_v2  ;;  %v140_v24 = vmov 0.0  }
   0x2   :  { %v20_v4 = vshrl.u32 %v19_v0, 7  ;;  %v44_v5 = vrot.slane %v11_v1, 7  ;;  %v12_v8 = vld [vmem:[%s174_s1] sm:$0x1]  ;;  %v108_v60 = vand.u32 127, %v19_v0 }
   0x3   :  { %v18_v6 = vunpack.c.0.s8 %v17_v3  ;;  %vm14_vm2 = vcmp.eq.s32.totalorder %v12_v8, 1  ;;  %vm13_vm3 = vcmp.ne.s32.totalorder %v12_v8, 4294967295 }
   0x4   :  { %vm46_vm0 = vcmp.gt.f32.partialorder %v11_v1, %v44_v5  ;;  %v50_v7 = vsub.s32 0, %v20_v4  ;;  %v123_v36 = vsel %vm13_vm3, 1.0, %v140_v24  ;;  %vm111_vm7 = vcmp.eq.s32.totalorder %v108_v60, 2 }
   0x5   :  { %v21_v9 = vsub.s32 %v18_v6, %v20_v4  ;;  %v47_v11 = vsel %vm46_vm0, 1, %v139_v10  ;;  %v85_v38 = vsel %vm72_vm5, %v123_v36, 0.0  ;;  %vm110_vm8 = vcmp.eq.s32.totalorder %v108_v60, 1 }
   0x6   :  { %v51_v12 = vrot.slane %v12_v8, %v50_v7  ;;  %vm109_vm9 = vcmp.eq.s32.totalorder %v108_v60, 0 }
   0x7   :  { %v22_v13 = vrot.slane %v11_v1, %v21_v9 }
   0x8   :  { %vm52_vm1 = vcmp.eq.s32.totalorder %v47_v11, %v51_v12 }
   0x9   :  { %v53_v14 = vsel %vm52_vm1, 1, %v139_v10  ;;  %v23_v15 = vcombine.high %v22_v13, %v22_v13 }
   0xa   :  { %v60_v16 = vrot.slane %v53_v14, %v21_v9 }
   0xb   :  { %v30_v17 = vrot.slane %v23_v15, %v21_v9 }
   0xc   :  { %v61_v18 = vcombine.high %v60_v16, %v60_v16 }
   0xd   :  { %v32_v19 = vsel %vm14_vm2, %v30_v17, %v11_v1  ;;  %v33_v20 = vsel %vm14_vm2, %v11_v1, %v30_v17 }
   0xe   :  { %v68_v21 = vrot.slane %v61_v18, %v21_v9  ;;  %v34_v22 = vsub.f32 %v33_v20, %v32_v19 }
  0x10   :  { %vm69_vm4 = vcmp.ne.s32.totalorder %v68_v21, 0  ;;  %v36_v23 = vand.u32 2147483647, %v34_v22  ;;  %v35_v31 = vmax.f32 %v34_v22, 0.0 }
  0x11   :  { %vm70_vm6 = vmand %vm13_vm3, %vm69_vm4 }
  0x12   :  { %v124_v25 = vsel %vm70_vm6, 1.0, %v140_v24  ;;  %v37_v26 = vsub.f32 0.0, %v36_v23 }
  0x13   :  { %v97_v27 = vsel %vm72_vm5, %v124_v25, 0.0 }
  0x14   :  { %98 = vadd.xlane.f32.xlu1 %v97_v27  ;;  %v38_v28 = vmul.f32 1.442695, %v37_v26 }
  0x16   :  { %134 = vpow2.f32 %v38_v28 }
  0x23   :  { %v135_v29 = vpop.eup %134 }
  0x24   :  { %v40_v30 = vadd.f32 1.0, %v135_v29 }
  0x26   :  { %136 = vlog2.f32 %v40_v30 }
  0x33   :  { %v137_v32 = vpop.eup %136 }
  0x34   :  { %v42_v33 = vmul.f32 0.6931472, %v137_v32 }
  0x36   :  { %v43_v34 = vadd.f32 %v42_v33, %v35_v31 }
  0x38   :  { %v71_v35 = vsel %vm13_vm3, %v43_v34, 0.0 }
  0x39   :  { %v73_v37 = vsel %vm72_vm5, %v71_v35, 0.0 }
  0x3a   :  { %74 = vadd.xlane.f32.xlu0 %v73_v37 }
  0x3e   :  { %86 = vadd.xlane.f32.xlu0 %v85_v38 }
  0x9d   :  { %v99_v39 = vpop.xlane.xlu1 %98 }
  0x9e   :  { %v100_v40 = vrot.slane %v99_v39, 4 }
  0xa0   :  { %v101_v41 = vadd.f32 %v100_v40, %v99_v39 }
  0xa2   :  { %v102_v45 = vrot.slane %v101_v41, 2 }
  0xa4   :  { %v103_v51 = vadd.f32 %v102_v45, %v101_v41 }
  0xa6   :  { %v104_v56 = vrot.slane %v103_v51, 1 }
  0xa8   :  { %v105_v59 = vadd.f32 %v104_v56, %v103_v51 }
  0xc3   :  { %v75_v42 = vpop.xlane.xlu0 %74 }
  0xc4   :  { %v76_v43 = vrot.slane %v75_v42, 4 }
  0xc6   :  { %v77_v44 = vadd.f32 %v76_v43, %v75_v42 }
  0xc7   :  { %v87_v46 = vpop.xlane.xlu0 %86 }
  0xc8   :  { %v78_v47 = vrot.slane %v77_v44, 2  ;;  %v88_v48 = vrot.slane %v87_v46, 4 }
  0xca   :  { %v89_v49 = vadd.f32 %v88_v48, %v87_v46  ;;  %v79_v50 = vadd.f32 %v78_v47, %v77_v44 }
  0xcc   :  { %v90_v52 = vrot.slane %v89_v49, 2  ;;  %v80_v53 = vrot.slane %v79_v50, 1 }
  0xce   :  { %v91_v54 = vadd.f32 %v90_v52, %v89_v49  ;;  %v81_v55 = vadd.f32 %v80_v53, %v79_v50 }
  0xd0   :  { %125 = vpush %v81_v55  ;;  %v92_v57 = vrot.slane %v91_v54, 1 }
  0xd2   :  { %v93_v58 = vadd.f32 %v92_v57, %v91_v54 }
  0xd4   :  { %127 = vpush %v93_v58 }
  0xd5   :  { %129 = vpush %v105_v59 }
 0x101   :  { %s126_s0 = spop %125 }
 0x102   :  { %v116_v1 = vstv %s126_s0 }
 0x105   :  { %s128_s1 = spop %127 }
 0x106   :  { %v114_v61 = vstv %s128_s1  ;;  %s130_s13 = spop %129 }
 0x107   :  { %v112_v62 = vstv %s130_s13 }
 0x108   :  { %v113_v63 = vsel %vm111_vm7, %v112_v62, 0.0 }
 0x109   :  { %v115_v2 = vsel %vm110_vm8, %v114_v61, %v113_v63 }
 0x10a   :  { %v117_v3 = vsel %vm109_vm9, %v116_v1, %v115_v2 }
 0x10b   :  { %118 = vst [vmem:[%s175_s2] sm:$0xff] %v117_v3 }

// kernel: _sdmgr_losses.2
= control target key start
LH: loop header
LB: loop body
LE: loop exit
PB: predicated region body
PF: predicated region fallthrough
CT: control target
= control target key end

     0   :  { %vm20_vm0 = vcmask 1043456   ;;  %v13_v6 = vlaneseq  ;;  %vm66_vm7 = vcmask 1040384   ;;  %v130_v24 = vmov 0.0   ;;  %s167_s0 = inlined_call_operand.vmem [shape: f32[4,128], index: 0, kind: input, shape index: {}]   ;;  %s168_s1 = inlined_call_operand.vmem [shape: s32[1,128], index: 1, kind: input, shape index: {}]   ;;  %s169_s2 = inlined_call_operand.vmem [shape: f32[1,8,128], index: 2, kind: output, shape index: {}]  }
   0x1   :  { %v11_v0 = vld [vmem:[%s167_s0] sm:$0xf] }
   0x2   :  { %v21_v1 = vsel %vm20_vm0, %v11_v0, -inf  ;;  %v14_v9 = vshrl.u32 %v13_v6, 7  ;;  %v12_v18 = vld [vmem:[%s168_s1] sm:$0x1] }
   0x3   :  { %v22_v2 = vrot.slane %v21_v1, 4  ;;  %vm50_vm4 = vcmp.ne.s32.totalorder %v12_v18, 4294967196 }
   0x4   :  { %v17_v17 = vsub.s32 0, %v14_v9  ;;  %v117_v47 = vsel %vm50_vm4, 1.0, %v130_v24 }
   0x5   :  { %v23_v3 = vmax.f32 %v21_v1, %v22_v2  ;;  %v79_v49 = vsel %vm66_vm7, %v117_v47, 0.0 }
   0x6   :  { %v18_v21 = vrot.slane %v12_v18, %v17_v17 }
   0x7   :  { %v24_v4 = vrot.slane %v23_v3, 2 }
   0x8   :  { %vm19_vm8 = vcmp.eq.s32.totalorder %v14_v9, %v18_v21 }
   0x9   :  { %v25_v5 = vmax.f32 %v23_v3, %v24_v4  ;;  %v41_v28 = vsel %vm19_vm8, %v11_v0, 0.0 }
   0xa   :  { %v42_v31 = vsel %vm20_vm0, %v41_v28, 0.0 }
   0xb   :  { %v26_v7 = vrot.slane %v25_v5, 1  ;;  %v43_v34 = vrot.slane %v42_v31, 4 }
   0xd   :  { %v27_v8 = vmax.f32 %v25_v5, %v26_v7  ;;  %v44_v37 = vadd.f32 %v43_v34, %v42_v31 }
   0xf   :  { %vm51_vm1 = vcmp.eq.f32.partialorder %v11_v0, %v27_v8  ;;  %v28_v10 = vsub.f32 %v11_v0, %v27_v8  ;;  %v45_v38 = vrot.slane %v44_v37, 2 }
  0x10   :  { %v52_v11 = vsel %vm51_vm1, %v14_v9, 4 }
  0x11   :  { %v53_v12 = vsel %vm20_vm0, %v52_v11, 2147483647  ;;  %v29_v13 = vmul.f32 1.442695, %v28_v10  ;;  %v46_v39 = vadd.f32 %v45_v38, %v44_v37 }
  0x12   :  { %v54_v14 = vrot.slane %v53_v12, 4 }
  0x13   :  { %126 = vpow2.f32 %v29_v13  ;;  %v47_v40 = vrot.slane %v46_v39, 1 }
  0x14   :  { %vm55_vm2 = vcmp.lt.s32.totalorder %v53_v12, %v54_v14 }
  0x15   :  { %v56_v15 = vsel %vm55_vm2, %v53_v12, %v54_v14  ;;  %v48_v43 = vadd.f32 %v47_v40, %v46_v39 }
  0x16   :  { %v57_v16 = vrot.slane %v56_v15, 2 }
  0x18   :  { %vm58_vm3 = vcmp.lt.s32.totalorder %v56_v15, %v57_v16 }
  0x19   :  { %v59_v19 = vsel %vm58_vm3, %v56_v15, %v57_v16 }
  0x1a   :  { %v60_v20 = vrot.slane %v59_v19, 1 }
  0x1c   :  { %vm61_vm5 = vcmp.lt.s32.totalorder %v59_v19, %v60_v20 }
  0x1d   :  { %v62_v22 = vsel %vm61_vm5, %v59_v19, %v60_v20 }
  0x1e   :  { %vm63_vm6 = vcmp.eq.s32.totalorder %v62_v22, %v12_v18 }
  0x1f   :  { %vm64_vm9 = vmand %vm50_vm4, %vm63_vm6 }
  0x20   :  { %v127_v23 = vpop.eup %126  ;;  %v118_v25 = vsel %vm64_vm9, 1.0, %v130_v24 }
  0x21   :  { %v91_v26 = vsel %vm66_vm7, %v118_v25, 0.0  ;;  %v31_v27 = vsel %vm20_vm0, %v127_v23, 0.0 }
  0x22   :  { %92 = vadd.xlane.f32.xlu1 %v91_v26  ;;  %v32_v29 = vrot.slane %v31_v27, 4 }
  0x24   :  { %v33_v30 = vadd.f32 %v32_v29, %v31_v27 }
  0x26   :  { %v34_v32 = vrot.slane %v33_v30, 2 }
  0x28   :  { %v35_v33 = vadd.f32 %v34_v32, %v33_v30 }
  0x2a   :  { %v36_v35 = vrot.slane %v35_v33, 1 }
  0x2c   :  { %v37_v36 = vadd.f32 %v36_v35, %v35_v33 }
  0x2e   :  { %128 = vlog2.f32 %v37_v36 }
  0x3b   :  { %v129_v41 = vpop.eup %128 }
  0x3c   :  { %v39_v42 = vmul.f32 0.6931472, %v129_v41 }
  0x3e   :  { %v40_v44 = vadd.f32 %v39_v42, %v27_v8  ;;  %v102_v8 = vand.u32 127, %v13_v6 }
  0x40   :  { %v49_v45 = vsub.f32 %v40_v44, %v48_v43  ;;  %vm105_vm10 = vcmp.eq.s32.totalorder %v102_v8, 2  ;;  %vm104_vm11 = vcmp.eq.s32.totalorder %v102_v8, 1  ;;  %vm103_vm12 = vcmp.eq.s32.totalorder %v102_v8, 0 }
  0x42   :  { %v65_v46 = vsel %vm50_vm4, %v49_v45, 0.0 }
  0x43   :  { %v67_v48 = vsel %vm66_vm7, %v65_v46, 0.0 }
  0x44   :  { %68 = vadd.xlane.f32.xlu0 %v67_v48 }
  0x48   :  { %80 = vadd.xlane.f32.xlu0 %v79_v49 }
  0xab   :  { %v93_v50 = vpop.xlane.xlu1 %92 }
  0xac   :  { %v94_v51 = vrot.slane %v93_v50, 4 }
  0xae   :  { %v95_v52 = vadd.f32 %v94_v51, %v93_v50 }
  0xb0   :  { %v96_v56 = vrot.slane %v95_v52, 2 }
  0xb2   :  { %v97_v62 = vadd.f32 %v96_v56, %v95_v52 }
  0xb4   :  { %v98_v3 = vrot.slane %v97_v62, 1 }
  0xb6   :  { %v99_v7 = vadd.f32 %v98_v3, %v97_v62 }
  0xcd   :  { %v69_v53 = vpop.xlane.xlu0 %68 }
  0xce   :  { %v70_v54 = vrot.slane %v69_v53, 4 }
  0xd0   :  { %v71_v55 = vadd.f32 %v70_v54, %v69_v53 }
  0xd1   :  { %v81_v57 = vpop.xlane.xlu0 %80 }
  0xd2   :  { %v72_v58 = vrot.slane %v71_v55, 2  ;;  %v82_v59 = vrot.slane %v81_v57, 4 }
  0xd4   :  { %v83_v60 = vadd.f32 %v82_v59, %v81_v57  ;;  %v73_v61 = vadd.f32 %v72_v58, %v71_v55 }
  0xd6   :  { %v84_v63 = vrot.slane %v83_v60, 2  ;;  %v74_v0 = vrot.slane %v73_v61, 1 }
  0xd8   :  { %v85_v1 = vadd.f32 %v84_v63, %v83_v60  ;;  %v75_v2 = vadd.f32 %v74_v0, %v73_v61 }
  0xda   :  { %119 = vpush %v75_v2  ;;  %v86_v4 = vrot.slane %v85_v1, 1 }
  0xdc   :  { %v87_v5 = vadd.f32 %v86_v4, %v85_v1 }
  0xde   :  { %121 = vpush %v87_v5 }
  0xdf   :  { %123 = vpush %v99_v7 }
 0x10b   :  { %s120_s1 = spop %119 }
 0x10c   :  { %v110_v12 = vstv %s120_s1 }
 0x10f   :  { %s122_s12 = spop %121 }
 0x110   :  { %v108_v9 = vstv %s122_s12  ;;  %s124_s13 = spop %123 }
 0x111   :  { %v106_v10 = vstv %s124_s13 }
 0x112   :  { %v107_v11 = vsel %vm105_vm10, %v106_v10, 0.0 }
 0x113   :  { %v109_v13 = vsel %vm104_vm11, %v108_v9, %v107_v11 }
 0x114   :  { %v111_v14 = vsel %vm103_vm12, %v110_v12, %v109_v13 }
 0x115   :  { %112 = vst [vmem:[%s169_s2] sm:$0xff] %v111_v14 }

</bundles_post_ra>
